<compile_context>
chip_gen: v6e
topology: v6e:2x2x1
jax: 0.10.0
libtpu: 0.0.40
codegen_flags: <defaults>
</compile_context>

<pallas_src>
import functools

import jax
import jax.numpy as jnp
from jax.experimental import pallas as pl
from jax.experimental.pallas import tpu as pltpu

observation_count = 10
irrelevant_data_multiplier = 1          # module constant (not defined in the snippet)
NUMBER_OF_BINS = 10

IN_DIM = observation_count * irrelevant_data_multiplier   # 10
HIDDEN = 100
OUT_DIM = NUMBER_OF_BINS                                   # 10

LANE = 128
IN_PAD = LANE      # 10  -> 128
HID_PAD = LANE     # 100 -> 128
OUT_PAD = LANE     # 10  -> 128

NEG_SLOPE = 0.01   # torch.nn.functional.leaky_relu default

DEFAULT_BLOCK_ROWS = 2048   # batch tile: ~7 MiB live VMEM, safe on all of v5e/v6e/v7x


def _leaky_relu(x):
    return jnp.where(x > 0, x, NEG_SLOPE * x)


def _round_up(n, m):
    return ((n + m - 1) // m) * m


def _pad_to(a, shape):
    pads = [(0, t - s) for s, t in zip(a.shape, shape)]
    return jnp.pad(a, pads)


def _sgan_mlp_kernel(x_ref, w1_ref, b1_ref, w2_ref, b2_ref,
                     w3_ref, b3_ref, w4_ref, b4_ref, o_ref, xpad_ref):
    """One (TB, *) batch tile of the 4-layer MLP; all four matmuls hit the MXU."""
    # Zero-extend the (TB, 10) input tile to 128 lanes in VMEM scratch so every
    # matmul is a lane/sublane-aligned (TB,128)x(128,128).  Re-zeroed each grid
    # step so correctness does not depend on which core ran step 0 when the
    # batch axis is sharded across TensorCores.
    xpad_ref[...] = jnp.zeros_like(xpad_ref)
    xpad_ref[:, :IN_DIM] = x_ref[...]

    h = jnp.dot(xpad_ref[...], w1_ref[...],
                preferred_element_type=jnp.float32) + b1_ref[...]
    h = _leaky_relu(h)
    h = jnp.dot(h, w2_ref[...], preferred_element_type=jnp.float32) + b2_ref[...]
    h = _leaky_relu(h)
    h = jnp.dot(h, w3_ref[...], preferred_element_type=jnp.float32) + b3_ref[...]
    h = _leaky_relu(h)
    h = jnp.dot(h, w4_ref[...], preferred_element_type=jnp.float32) + b4_ref[...]

    o_ref[...] = h.astype(o_ref.dtype)


def prepare_params(params):
    """Pad weights/biases to MXU-native (128,128)/(1,128) tiles ONCE, at rest."""
    (w1, b1), (w2, b2), (w3, b3), (w4, b4) = params
    f32 = jnp.float32
    return (
        _pad_to(w1.astype(f32), (IN_PAD, HID_PAD)),
        _pad_to(b1.astype(f32)[None, :], (1, HID_PAD)),
        _pad_to(w2.astype(f32), (HID_PAD, HID_PAD)),
        _pad_to(b2.astype(f32)[None, :], (1, HID_PAD)),
        _pad_to(w3.astype(f32), (HID_PAD, HID_PAD)),
        _pad_to(b3.astype(f32)[None, :], (1, HID_PAD)),
        _pad_to(w4.astype(f32), (HID_PAD, OUT_PAD)),
        _pad_to(b4.astype(f32)[None, :], (1, OUT_PAD)),
    )


@functools.partial(jax.jit, static_argnames=("block_rows",))
def sgan_mlp_forward(x, padded_params, *, block_rows=DEFAULT_BLOCK_ROWS):
    """x: (batch, IN_DIM) float32; padded_params from prepare_params()."""
    batch = x.shape[0]
    tb = min(block_rows, _round_up(batch, 8))     # batch tile (multiple of 8 sublanes)
    batch_pad = _round_up(batch, tb)
    n_blocks = batch_pad // tb

    x_p = x.astype(jnp.float32)
    if batch_pad != batch:
        # Row padding only; the 10 feature lanes are NOT padded on the host.
        x_p = jnp.pad(x_p, ((0, batch_pad - batch), (0, 0)))

    w1p, b1p, w2p, b2p, w3p, b3p, w4p, b4p = padded_params

    def const(shape):                 # weights/biases: same block every step
        return pl.BlockSpec(shape, lambda i: (0, 0))

    weight_bytes = 4 * (w1p.size + b1p.size + w2p.size + b2p.size +
                        w3p.size + b3p.size + w4p.size + b4p.size)
    cost = pl.CostEstimate(
        flops=2 * batch_pad * (IN_PAD * HID_PAD + 2 * HID_PAD * HID_PAD
                               + HID_PAD * OUT_PAD),
        transcendentals=0,
        bytes_accessed=4 * (batch_pad * IN_DIM + batch_pad * OUT_PAD) + weight_bytes,
    )

    out = pl.pallas_call(
        _sgan_mlp_kernel,
        out_shape=jax.ShapeDtypeStruct((batch_pad, OUT_PAD), jnp.float32),
        grid_spec=pltpu.PrefetchScalarGridSpec(
            num_scalar_prefetch=0,
            grid=(n_blocks,),
            in_specs=[
                pl.BlockSpec((tb, IN_DIM), lambda i: (i, 0)),    # x tile (unpadded lanes)
                const((IN_PAD, HID_PAD)), const((1, HID_PAD)),   # layer 1
                const((HID_PAD, HID_PAD)), const((1, HID_PAD)),  # layer 2
                const((HID_PAD, HID_PAD)), const((1, HID_PAD)),  # layer 3
                const((HID_PAD, OUT_PAD)), const((1, OUT_PAD)),  # layer 4
            ],
            out_specs=pl.BlockSpec((tb, OUT_PAD), lambda i: (i, 0)),
            scratch_shapes=[pltpu.VMEM((tb, IN_PAD), jnp.float32)],
        ),
        compiler_params=pltpu.CompilerParams(
            dimension_semantics=("parallel",)),   # v7x: shard batch over both TCs
        cost_estimate=cost,
    )(x_p, w1p, b1p, w2p, b2p, w3p, b3p, w4p, b4p)

    return jnp.squeeze(out[:batch, :OUT_DIM])


def init_params(key):
    """Deterministic init mimicking torch.nn.Linear (uniform +/- 1/sqrt(fan_in)).

    Weights are stored as (in, out) so the kernel computes x @ W + b.
    """
    dims = [(IN_DIM, HIDDEN), (HIDDEN, HIDDEN), (HIDDEN, HIDDEN), (HIDDEN, OUT_DIM)]
    params = []
    for fan_in, fan_out in dims:
        key, kw, kb = jax.random.split(key, 3)
        bound = 1.0 / jnp.sqrt(float(fan_in))
        w = jax.random.uniform(kw, (fan_in, fan_out), jnp.float32, -bound, bound)
        b = jax.random.uniform(kb, (fan_out,), jnp.float32, -bound, bound)
        params.append((w, b))
    return params


def _reference(x, params):
    h = x
    for i, (w, b) in enumerate(params):
        h = h @ w + b
        if i < 3:
            h = _leaky_relu(h)
    return jnp.squeeze(h)


if __name__ == "__main__":
    key = jax.random.PRNGKey(0)
    key, kx, kx2 = jax.random.split(key, 3)
    params = init_params(key)
    padded = prepare_params(params)   # pad weights once, at rest

    # Small batch (single grid step), same shape as the original test.
    batch = 8
    x = jax.random.normal(kx, (batch, IN_DIM), jnp.float32)
    out = jax.block_until_ready(sgan_mlp_forward(x, padded))
    ref = _reference(x, params)
    assert out.shape == ref.shape == (batch, OUT_DIM)
    assert jnp.allclose(out, ref, atol=1e-5, rtol=1e-5), \
        f"max err {jnp.max(jnp.abs(out - ref))}"

    # Non-multiple batch exercising the batch grid (3 steps of 128 rows).
    batch2 = 300
    x2 = jax.random.normal(kx2, (batch2, IN_DIM), jnp.float32)
    out2 = jax.block_until_ready(sgan_mlp_forward(x2, padded, block_rows=128))
    ref2 = _reference(x2, params)
    assert out2.shape == ref2.shape == (batch2, OUT_DIM)
    assert jnp.allclose(out2, ref2, atol=1e-5, rtol=1e-5), \
        f"max err {jnp.max(jnp.abs(out2 - ref2))}"

    print("KERNEL_OK")
</pallas_src>

<mosaic_0001>
module attributes {stable_mosaic.version = 11 : i64} {
  func.func @_sgan_mlp_kernel(%arg0: i32, %arg1: memref<8x10xf32, #tpu.memory_space<vmem>>, %arg2: memref<128x128xf32, #tpu.memory_space<vmem>>, %arg3: memref<1x128xf32, #tpu.memory_space<vmem>>, %arg4: memref<128x128xf32, #tpu.memory_space<vmem>>, %arg5: memref<1x128xf32, #tpu.memory_space<vmem>>, %arg6: memref<128x128xf32, #tpu.memory_space<vmem>>, %arg7: memref<1x128xf32, #tpu.memory_space<vmem>>, %arg8: memref<128x128xf32, #tpu.memory_space<vmem>>, %arg9: memref<1x128xf32, #tpu.memory_space<vmem>>, %arg10: memref<8x128xf32, #tpu.memory_space<vmem>>, %arg11: memref<8x128xf32, #tpu.memory_space<vmem>>) attributes {dimension_semantics = [#tpu.dimension_semantics<parallel>], iteration_bounds = array<i64: 1>, scalar_prefetch = 0 : i64, scratch_operands = 1 : i64, tpu.core_type = #tpu.core_type<tc>, window_params = [{transform_indices = @transform_0, window_bounds = array<i64: 8, 10>}, {pipeline_mode = #tpu.pipeline_mode<synchronous>, transform_indices = @transform_1, window_bounds = array<i64: 128, 128>}, {pipeline_mode = #tpu.pipeline_mode<synchronous>, transform_indices = @transform_2, window_bounds = array<i64: 1, 128>}, {pipeline_mode = #tpu.pipeline_mode<synchronous>, transform_indices = @transform_3, window_bounds = array<i64: 128, 128>}, {pipeline_mode = #tpu.pipeline_mode<synchronous>, transform_indices = @transform_4, window_bounds = array<i64: 1, 128>}, {pipeline_mode = #tpu.pipeline_mode<synchronous>, transform_indices = @transform_5, window_bounds = array<i64: 128, 128>}, {pipeline_mode = #tpu.pipeline_mode<synchronous>, transform_indices = @transform_6, window_bounds = array<i64: 1, 128>}, {pipeline_mode = #tpu.pipeline_mode<synchronous>, transform_indices = @transform_7, window_bounds = array<i64: 128, 128>}, {pipeline_mode = #tpu.pipeline_mode<synchronous>, transform_indices = @transform_8, window_bounds = array<i64: 1, 128>}, {transform_indices = @transform_9, window_bounds = array<i64: 8, 128>}]} {
    %cst = arith.constant 0.000000e+00 : f32
    %0 = vector.broadcast %cst : f32 to vector<8x128xf32>
    %c0 = arith.constant 0 : index
    %c0_0 = arith.constant 0 : index
    %1 = vector.load %arg11[%c0, %c0_0] : memref<8x128xf32, #tpu.memory_space<vmem>>, vector<8x128xf32>
    tpu.vector_store %arg11[%c0, %c0_0], %0 {strides = array<i32>} : memref<8x128xf32, #tpu.memory_space<vmem>>, vector<8x128xf32>,
    %c0_1 = arith.constant 0 : index
    %c0_2 = arith.constant 0 : index
    %2 = vector.load %arg1[%c0_1, %c0_2] : memref<8x10xf32, #tpu.memory_space<vmem>>, vector<8x10xf32>
    %c0_3 = arith.constant 0 : index
    %c0_4 = arith.constant 0 : index
    %3 = vector.load %arg11[%c0_3, %c0_4] : memref<8x128xf32, #tpu.memory_space<vmem>>, vector<8x10xf32>
    tpu.vector_store %arg11[%c0_3, %c0_4], %2 {strides = array<i32>} : memref<8x128xf32, #tpu.memory_space<vmem>>, vector<8x10xf32>,
    %c0_5 = arith.constant 0 : index
    %c0_6 = arith.constant 0 : index
    %4 = vector.load %arg11[%c0_5, %c0_6] : memref<8x128xf32, #tpu.memory_space<vmem>>, vector<8x128xf32>
    %c0_7 = arith.constant 0 : index
    %c0_8 = arith.constant 0 : index
    %5 = vector.load %arg2[%c0_7, %c0_8] : memref<128x128xf32, #tpu.memory_space<vmem>>, vector<128x128xf32>
    %cst_9 = arith.constant dense<0.000000e+00> : vector<8x128xf32>
    %6 = tpu.matmul %4, %5, %cst_9 {dimension_numbers = #tpu.dot_dimension_numbers<[1], [0], [0], [1], [0, 0, 1, 1], [], []>} : vector<8x128xf32>, vector<128x128xf32>, vector<8x128xf32> -> vector<8x128xf32>
    %c0_10 = arith.constant 0 : index
    %c0_11 = arith.constant 0 : index
    %7 = vector.load %arg3[%c0_10, %c0_11] : memref<1x128xf32, #tpu.memory_space<vmem>>, vector<1x128xf32>
    %8 = vector.broadcast %7 : vector<1x128xf32> to vector<8x128xf32>
    %9 = arith.addf %6, %8 : vector<8x128xf32>
    %cst_12 = arith.constant 0.000000e+00 : f32
    %10 = vector.broadcast %cst_12 : f32 to vector<8x128xf32>
    %11 = arith.cmpf ogt, %9, %10 : vector<8x128xf32>
    %cst_13 = arith.constant 0.00999999977 : f32
    %12 = vector.broadcast %cst_13 : f32 to vector<8x128xf32>
    %13 = arith.mulf %12, %9 : vector<8x128xf32>
    %14 = arith.select %11, %9, %13 : vector<8x128xi1>, vector<8x128xf32>
    %c0_14 = arith.constant 0 : index
    %c0_15 = arith.constant 0 : index
    %15 = vector.load %arg4[%c0_14, %c0_15] : memref<128x128xf32, #tpu.memory_space<vmem>>, vector<128x128xf32>
    %cst_16 = arith.constant dense<0.000000e+00> : vector<8x128xf32>
    %16 = tpu.matmul %14, %15, %cst_16 {dimension_numbers = #tpu.dot_dimension_numbers<[1], [0], [0], [1], [0, 0, 1, 1], [], []>} : vector<8x128xf32>, vector<128x128xf32>, vector<8x128xf32> -> vector<8x128xf32>
    %c0_17 = arith.constant 0 : index
    %c0_18 = arith.constant 0 : index
    %17 = vector.load %arg5[%c0_17, %c0_18] : memref<1x128xf32, #tpu.memory_space<vmem>>, vector<1x128xf32>
    %18 = vector.broadcast %17 : vector<1x128xf32> to vector<8x128xf32>
    %19 = arith.addf %16, %18 : vector<8x128xf32>
    %cst_19 = arith.constant 0.000000e+00 : f32
    %20 = vector.broadcast %cst_19 : f32 to vector<8x128xf32>
    %21 = arith.cmpf ogt, %19, %20 : vector<8x128xf32>
    %cst_20 = arith.constant 0.00999999977 : f32
    %22 = vector.broadcast %cst_20 : f32 to vector<8x128xf32>
    %23 = arith.mulf %22, %19 : vector<8x128xf32>
    %24 = arith.select %21, %19, %23 : vector<8x128xi1>, vector<8x128xf32>
    %c0_21 = arith.constant 0 : index
    %c0_22 = arith.constant 0 : index
    %25 = vector.load %arg6[%c0_21, %c0_22] : memref<128x128xf32, #tpu.memory_space<vmem>>, vector<128x128xf32>
    %cst_23 = arith.constant dense<0.000000e+00> : vector<8x128xf32>
    %26 = tpu.matmul %24, %25, %cst_23 {dimension_numbers = #tpu.dot_dimension_numbers<[1], [0], [0], [1], [0, 0, 1, 1], [], []>} : vector<8x128xf32>, vector<128x128xf32>, vector<8x128xf32> -> vector<8x128xf32>
    %c0_24 = arith.constant 0 : index
    %c0_25 = arith.constant 0 : index
    %27 = vector.load %arg7[%c0_24, %c0_25] : memref<1x128xf32, #tpu.memory_space<vmem>>, vector<1x128xf32>
    %28 = vector.broadcast %27 : vector<1x128xf32> to vector<8x128xf32>
    %29 = arith.addf %26, %28 : vector<8x128xf32>
    %cst_26 = arith.constant 0.000000e+00 : f32
    %30 = vector.broadcast %cst_26 : f32 to vector<8x128xf32>
    %31 = arith.cmpf ogt, %29, %30 : vector<8x128xf32>
    %cst_27 = arith.constant 0.00999999977 : f32
    %32 = vector.broadcast %cst_27 : f32 to vector<8x128xf32>
    %33 = arith.mulf %32, %29 : vector<8x128xf32>
    %34 = arith.select %31, %29, %33 : vector<8x128xi1>, vector<8x128xf32>
    %c0_28 = arith.constant 0 : index
    %c0_29 = arith.constant 0 : index
    %35 = vector.load %arg8[%c0_28, %c0_29] : memref<128x128xf32, #tpu.memory_space<vmem>>, vector<128x128xf32>
    %cst_30 = arith.constant dense<0.000000e+00> : vector<8x128xf32>
    %36 = tpu.matmul %34, %35, %cst_30 {dimension_numbers = #tpu.dot_dimension_numbers<[1], [0], [0], [1], [0, 0, 1, 1], [], []>} : vector<8x128xf32>, vector<128x128xf32>, vector<8x128xf32> -> vector<8x128xf32>
    %c0_31 = arith.constant 0 : index
    %c0_32 = arith.constant 0 : index
    %37 = vector.load %arg9[%c0_31, %c0_32] : memref<1x128xf32, #tpu.memory_space<vmem>>, vector<1x128xf32>
    %38 = vector.broadcast %37 : vector<1x128xf32> to vector<8x128xf32>
    %39 = arith.addf %36, %38 : vector<8x128xf32>
    %c0_33 = arith.constant 0 : index
    %c0_34 = arith.constant 0 : index
    %40 = vector.load %arg10[%c0_33, %c0_34] : memref<8x128xf32, #tpu.memory_space<vmem>>, vector<8x128xf32>
    tpu.vector_store %arg10[%c0_33, %c0_34], %39 {strides = array<i32>} : memref<8x128xf32, #tpu.memory_space<vmem>>, vector<8x128xf32>,
    return
  }
  func.func @transform_0(%arg0: i32) -> (i32, i32) {
    %c0_i32 = arith.constant 0 : i32
    %c0_i32_0 = arith.constant 0 : i32
    return %arg0, %c0_i32 : i32, i32
  }
  func.func @transform_1(%arg0: i32) -> (i32, i32) {
    %c0_i32 = arith.constant 0 : i32
    %c0_i32_0 = arith.constant 0 : i32
    %c0_i32_1 = arith.constant 0 : i32
    return %c0_i32, %c0_i32_0 : i32, i32
  }
  func.func @transform_2(%arg0: i32) -> (i32, i32) {
    %c0_i32 = arith.constant 0 : i32
    %c0_i32_0 = arith.constant 0 : i32
    %c0_i32_1 = arith.constant 0 : i32
    return %c0_i32, %c0_i32_0 : i32, i32
  }
  func.func @transform_3(%arg0: i32) -> (i32, i32) {
    %c0_i32 = arith.constant 0 : i32
    %c0_i32_0 = arith.constant 0 : i32
    %c0_i32_1 = arith.constant 0 : i32
    return %c0_i32, %c0_i32_0 : i32, i32
  }
  func.func @transform_4(%arg0: i32) -> (i32, i32) {
    %c0_i32 = arith.constant 0 : i32
    %c0_i32_0 = arith.constant 0 : i32
    %c0_i32_1 = arith.constant 0 : i32
    return %c0_i32, %c0_i32_0 : i32, i32
  }
  func.func @transform_5(%arg0: i32) -> (i32, i32) {
    %c0_i32 = arith.constant 0 : i32
    %c0_i32_0 = arith.constant 0 : i32
    %c0_i32_1 = arith.constant 0 : i32
    return %c0_i32, %c0_i32_0 : i32, i32
  }
  func.func @transform_6(%arg0: i32) -> (i32, i32) {
    %c0_i32 = arith.constant 0 : i32
    %c0_i32_0 = arith.constant 0 : i32
    %c0_i32_1 = arith.constant 0 : i32
    return %c0_i32, %c0_i32_0 : i32, i32
  }
  func.func @transform_7(%arg0: i32) -> (i32, i32) {
    %c0_i32 = arith.constant 0 : i32
    %c0_i32_0 = arith.constant 0 : i32
    %c0_i32_1 = arith.constant 0 : i32
    return %c0_i32, %c0_i32_0 : i32, i32
  }
  func.func @transform_8(%arg0: i32) -> (i32, i32) {
    %c0_i32 = arith.constant 0 : i32
    %c0_i32_0 = arith.constant 0 : i32
    %c0_i32_1 = arith.constant 0 : i32
    return %c0_i32, %c0_i32_0 : i32, i32
  }
  func.func @transform_9(%arg0: i32) -> (i32, i32) {
    %c0_i32 = arith.constant 0 : i32
    %c0_i32_0 = arith.constant 0 : i32
    return %arg0, %c0_i32 : i32, i32
  }
}

</mosaic_0001>

<bundles_post_ra>
// kernel: sgan_mlp_forward.1
= control target key start
LH: loop header
LB: loop body
LE: loop exit
PB: predicated region body
PF: predicated region fallthrough
CT: control target
= control target key end

     0   :  { %14 = vsyncpa [#allocation4], 0  ;;  %s1028_s0 = inlined_call_operand.hbm [shape: f32[8,10], index: 0, kind: input, shape index: {}]   ;;  %s1029_s1 = inlined_call_operand.hbm [shape: f32[128,128], index: 1, kind: input, shape index: {}]   ;;  %s1030_s2 = inlined_call_operand.vmem [shape: f32[1,128], index: 2, kind: input, shape index: {}]   ;;  %s1031_s3 = inlined_call_operand.hbm [shape: f32[128,128], index: 3, kind: input, shape index: {}]   ;;  %s1032_s4 = inlined_call_operand.vmem [shape: f32[1,128], index: 4, kind: input, shape index: {}]   ;;  %s1033_s5 = inlined_call_operand.hbm [shape: f32[128,128], index: 5, kind: input, shape index: {}]   ;;  %s1034_s6 = inlined_call_operand.vmem [shape: f32[1,128], index: 6, kind: input, shape index: {}]   ;;  %s1035_s7 = inlined_call_operand.hbm [shape: f32[128,128], index: 7, kind: input, shape index: {}]   ;;  %s1036_s8 = inlined_call_operand.vmem [shape: f32[1,128], index: 8, kind: input, shape index: {}]   ;;  %s1037_s9 = inlined_call_operand.hbm [shape: f32[8,128], index: 9, kind: output, shape index: {}]  }
   0x1   :  { %15 = vsyncpa [#allocation7], 0 }
   0x2   :  { %16 = vsyncpa [#allocation10], 0 }
   0x3   :  { %17 = vsyncpa [#allocation5], 0  ;;  %s853_s30 = smov [#allocation6]  }
   0x4   :  { %s33_s10 = sshll.u32 %s853_s30, 4  ;;  %s34_s10 = int_to_ptr.vmem [resolvable:$true] %s33_s10 }
   0x5   :  { %s733_s11 = scalar_lea.vmem %s34_s10, 2048  ;;  %p738_p1 = scmp.lt.s32.totalorder %s34_s10, %s34_s10 }
   0x6   :  { %p734_p0 = scmp.ne.s32.totalorder %s34_s10, %s733_s11  ;;  %p739_p2 = scmp.lt.s32.totalorder %s733_s11, %s733_s11 }
   0x8   :  { %p740_p3 = por %p739_p2, %p738_p1 }
   0xa   :  { %p741_p4 = pnand %p740_p3, %p734_p0 }
   0xc   :  { %744 = shalt.err (!%p741_p4)
}
   0xd   :  { %s854_s12 = smov 128   ;;  %s855_s13 = smov 8  }
   0xe   :  { %39 = dma.hbm_to_vmem [thread:$0]  %s1029_s1, 2048, %s34_s10, [#allocation7], %s854_s12, %s854_s12, %s855_s13  }
   0xf   :  { %s856_s16 = smov [#allocation9]   ;;  %s857_s18 = smov [#allocation3]  }
  0x10   :  { %s61_s17 = sshll.u32 %s856_s16, 4  ;;  %s24_s19 = sshll.u32 %s857_s18, 4  ;;  %s62_s17 = int_to_ptr.vmem [resolvable:$true] %s61_s17  ;;  %s25_s19 = int_to_ptr.vmem [resolvable:$true] %s24_s19 }
  0x11   :  { %s753_s20 = scalar_lea.vmem %s62_s17, 2048  ;;  %p758_p6 = scmp.lt.s32.totalorder %s62_s17, %s62_s17 }
  0x12   :  { %p754_p5 = scmp.ne.s32.totalorder %s62_s17, %s753_s20  ;;  %p759_p7 = scmp.lt.s32.totalorder %s753_s20, %s753_s20 }
  0x14   :  { %p760_p8 = por %p759_p7, %p758_p6 }
  0x16   :  { %p761_p9 = pnand %p760_p8, %p754_p5 }
  0x18   :  { %764 = shalt.err (!%p761_p9)
}
  0x19   :  { %67 = dma.hbm_to_vmem [thread:$0]  %s1033_s5, 2048, %s62_s17, [#allocation10], %s854_s12, %s854_s12, %s855_s13  }
  0x1a   :  { %s773_s1 = scalar_lea.vmem %s25_s19, 128  ;;  %p778_p11 = scmp.lt.s32.totalorder %s25_s19, %s25_s19 }
  0x1b   :  { %p774_p10 = scmp.ne.s32.totalorder %s25_s19, %s773_s1  ;;  %p779_p12 = scmp.lt.s32.totalorder %s773_s1, %s773_s1 }
  0x1d   :  { %p780_p13 = por %p779_p12, %p778_p11 }
  0x1f   :  { %p781_p0 = pnand %p780_p13, %p774_p10 }
  0x21   :  { %784 = shalt.err (!%p781_p0)
}
  0x22   :  { %27 = dma.hbm_to_vmem [thread:$0]  %s1028_s0, 128, %s25_s19, [#allocation4]  }
  0x23   :  { %s858_s25 = smov [#allocation8]   ;;  %s859_s27 = smov [#allocation11]  }
  0x24   :  { %s47_s26 = sshll.u32 %s858_s25, 4  ;;  %s75_s28 = sshll.u32 %s859_s27, 4  ;;  %s48_s26 = int_to_ptr.vmem [resolvable:$true] %s47_s26  ;;  %s76_s28 = int_to_ptr.vmem [resolvable:$true] %s75_s28 }
  0x25   :  { %s793_s29 = scalar_lea.vmem %s48_s26, 2048  ;;  %p798_p2 = scmp.lt.s32.totalorder %s48_s26, %s48_s26 }
  0x26   :  { %p794_p1 = scmp.ne.s32.totalorder %s48_s26, %s793_s29  ;;  %p799_p3 = scmp.lt.s32.totalorder %s793_s29, %s793_s29 }
  0x28   :  { %p800_p4 = por %p799_p3, %p798_p2 }
  0x2a   :  { %p801_p5 = pnand %p800_p4, %p794_p1 }
  0x2c   :  { %804 = shalt.err (!%p801_p5)
}
  0x2d   :  { %53 = dma.hbm_to_vmem [thread:$0]  %s1031_s3, 2048, %s48_s26, [#allocation7], %s854_s12, %s854_s12, %s855_s13  }
  0x2e   :  { %s813_s0 = scalar_lea.vmem %s76_s28, 2048  ;;  %p818_p7 = scmp.lt.s32.totalorder %s76_s28, %s76_s28 }
  0x2f   :  { %p814_p6 = scmp.ne.s32.totalorder %s76_s28, %s813_s0  ;;  %p819_p8 = scmp.lt.s32.totalorder %s813_s0, %s813_s0 }
  0x31   :  { %p820_p9 = por %p819_p8, %p818_p7 }
  0x33   :  { %p821_p10 = pnand %p820_p9, %p814_p6 }
  0x35   :  { %824 = shalt.err (!%p821_p10)
}
  0x36   :  { %81 = dma.hbm_to_vmem [thread:$0]  %s1035_s7, 2048, %s76_s28, [#allocation10], %s854_s12, %s854_s12, %s855_s13  }
  0x37   :  { %845 = dma.done.wait [#allocation4], 128  }
  0x38   :  { %846 = vsyncadd [#allocation4], 4294967168 }
  0x39   :  { %847 = dma.done.wait [#allocation7], 4096  }
  0x3a   :  { %848 = vsyncadd [#allocation7], 4294963200 }
  0x3b   :  { %849 = dma.done.wait [#allocation10], 4096  }
  0x3c   :  { %850 = vsyncadd [#allocation10], 4294963200  ;;  %v860_v0 = vmov 0.0   ;;  %vm861_vm0 = vmmov 0   ;;  %v119_v1 = vld [vmem:[#allocation6 + $0x78] sm:$0xff]  ;;  %v118_v2 = vld [vmem:[#allocation6 + $0x70] sm:$0xff] }
  0x3d   :  { %575 = vmatprep.subr.mxu0 %v860_v0  ;;  %99 = vst [vmem:[#allocation2] sm:$0xff] %v860_v0  ;;  %607 = vmatprep.mubr.msk.f32.mxu0 %vm861_vm0, %v860_v0  ;;  %v117_v3 = vld [vmem:[#allocation6 + $0x68] sm:$0xff]  ;;  %vm101_vm1 = vcmask 80896   ;;  %v116_v4 = vld [vmem:[#allocation6 + $0x60] sm:$0xff]  ;;  %v100_v5 = vld [vmem:[#allocation3] sm:$0xff]  ;;  %s862_s16 = smov [#allocation12]  }
  0x3e   :  { %610 = vmatprep.subr.mxu1 %v860_v0  ;;  %642 = vmatprep.mubr.msk.f32.mxu1 %vm861_vm0, %v860_v0  ;;  %v215_v6 = vld [vmem:[#allocation8 + $0x78] sm:$0xff]  ;;  %102 = vst.msk [vmem:[#allocation2] sm:$0xff] %vm101_vm1, %v100_v5  ;;  %v214_v8 = vld [vmem:[#allocation8 + $0x70] sm:$0xff]  ;;  %v213_v9 = vld [vmem:[#allocation8 + $0x68] sm:$0xff]  ;;  %s492_s17 = sshll.u32 %s862_s16, 4  ;;  %s493_s17 = int_to_ptr.vmem [resolvable:$true] %s492_s17 }
  0x3f   :  { %576 = vmatpush3.msra.mxu0 %v119_v1  ;;  %v115_v7 = vld [vmem:[#allocation6 + $0x58] sm:$0xff]  ;;  %611 = vmatpush3.msra.mxu1 %v215_v6  ;;  %v114_v10 = vld [vmem:[#allocation6 + $0x50] sm:$0xff]  ;;  %v212_v11 = vld [vmem:[#allocation8 + $0x60] sm:$0xff]  ;;  %s825_s18 = scalar_lea.vmem %s493_s17, 128  ;;  %p830_p12 = scmp.lt.s32.totalorder %s493_s17, %s493_s17 }
  0x40   :  { %577 = vmatprep.subr.mxu0 %v860_v0  ;;  %612 = vmatprep.subr.mxu1 %v860_v0  ;;  %v113_v12 = vld [vmem:[#allocation6 + $0x48] sm:$0xff]  ;;  %v211_v13 = vld [vmem:[#allocation8 + $0x58] sm:$0xff]  ;;  %v112_v14 = vld [vmem:[#allocation6 + $0x40] sm:$0xff]  ;;  %p826_p11 = scmp.ne.s32.totalorder %s493_s17, %s825_s18  ;;  %p831_p13 = scmp.lt.s32.totalorder %s825_s18, %s825_s18 }
  0x41   :  { %578 = vmatpush3.msra.mxu0 %v118_v2  ;;  %613 = vmatpush3.msra.mxu1 %v214_v8  ;;  %v210_v15 = vld [vmem:[#allocation8 + $0x50] sm:$0xff]  ;;  %v111_v16 = vld [vmem:[#allocation6 + $0x38] sm:$0xff]  ;;  %v209_v17 = vld [vmem:[#allocation8 + $0x48] sm:$0xff] }
  0x42   :  { %579 = vmatprep.subr.mxu0 %v860_v0  ;;  %614 = vmatprep.subr.mxu1 %v860_v0  ;;  %v110_v18 = vld [vmem:[#allocation6 + $0x30] sm:$0xff]  ;;  %v208_v19 = vld [vmem:[#allocation8 + $0x40] sm:$0xff]  ;;  %v109_v20 = vld [vmem:[#allocation6 + $0x28] sm:$0xff]  ;;  %p832_p0 = por %p831_p13, %p830_p12 }
  0x43   :  { %580 = vmatpush3.msra.mxu0 %v117_v3  ;;  %615 = vmatpush3.msra.mxu1 %v213_v9  ;;  %v207_v21 = vld [vmem:[#allocation8 + $0x38] sm:$0xff]  ;;  %v108_v22 = vld [vmem:[#allocation6 + $0x20] sm:$0xff]  ;;  %v206_v23 = vld [vmem:[#allocation8 + $0x30] sm:$0xff] }
  0x44   :  { %581 = vmatprep.subr.mxu0 %v860_v0  ;;  %616 = vmatprep.subr.mxu1 %v860_v0  ;;  %v107_v24 = vld [vmem:[#allocation6 + $0x18] sm:$0xff]  ;;  %v205_v25 = vld [vmem:[#allocation8 + $0x28] sm:$0xff]  ;;  %v106_v26 = vld [vmem:[#allocation6 + $0x10] sm:$0xff]  ;;  %p833_p1 = pnand %p832_p0, %p826_p11 }
  0x45   :  { %582 = vmatpush3.msra.mxu0 %v116_v4  ;;  %617 = vmatpush3.msra.mxu1 %v212_v11  ;;  %v204_v27 = vld [vmem:[#allocation8 + $0x20] sm:$0xff]  ;;  %v105_v28 = vld [vmem:[#allocation6 + $0x8] sm:$0xff]  ;;  %v203_v29 = vld [vmem:[#allocation8 + $0x18] sm:$0xff] }
  0x46   :  { %583 = vmatprep.subr.mxu0 %v860_v0  ;;  %618 = vmatprep.subr.mxu1 %v860_v0  ;;  %v104_v30 = vld [vmem:[#allocation6] sm:$0xff]  ;;  %v103_v31 = vld [vmem:[#allocation2] sm:$0xff]  ;;  %v201_v33 = vld [vmem:[#allocation8 + $0x8] sm:$0xff] }
  0x47   :  { %584 = vmatpush3.msra.mxu0 %v115_v7  ;;  %619 = vmatpush3.msra.mxu1 %v211_v13  ;;  %v202_v32 = vld [vmem:[#allocation8 + $0x10] sm:$0xff]  ;;  %v200_v34 = vld [vmem:[#allocation8] sm:$0xff]  ;;  %v311_v35 = vld [vmem:[#allocation9 + $0x78] sm:$0xff] }
  0x48   :  { %585 = vmatprep.subr.mxu0 %v860_v0  ;;  %620 = vmatprep.subr.mxu1 %v860_v0  ;;  %v310_v36 = vld [vmem:[#allocation9 + $0x70] sm:$0xff]  ;;  %v309_v37 = vld [vmem:[#allocation9 + $0x68] sm:$0xff]  ;;  %v308_v38 = vld [vmem:[#allocation9 + $0x60] sm:$0xff] }
  0x49   :  { %586 = vmatpush3.msra.mxu0 %v114_v10  ;;  %621 = vmatpush3.msra.mxu1 %v210_v15  ;;  %v307_v39 = vld [vmem:[#allocation9 + $0x58] sm:$0xff]  ;;  %v306_v40 = vld [vmem:[#allocation9 + $0x50] sm:$0xff]  ;;  %v305_v41 = vld [vmem:[#allocation9 + $0x48] sm:$0xff] }
  0x4a   :  { %587 = vmatprep.subr.mxu0 %v860_v0  ;;  %622 = vmatprep.subr.mxu1 %v860_v0  ;;  %v304_v42 = vld [vmem:[#allocation9 + $0x40] sm:$0xff]  ;;  %v303_v43 = vld [vmem:[#allocation9 + $0x38] sm:$0xff]  ;;  %v302_v44 = vld [vmem:[#allocation9 + $0x30] sm:$0xff] }
  0x4b   :  { %588 = vmatpush3.msra.mxu0 %v113_v12  ;;  %623 = vmatpush3.msra.mxu1 %v209_v17  ;;  %v301_v45 = vld [vmem:[#allocation9 + $0x28] sm:$0xff]  ;;  %v300_v46 = vld [vmem:[#allocation9 + $0x20] sm:$0xff]  ;;  %v299_v47 = vld [vmem:[#allocation9 + $0x18] sm:$0xff] }
  0x4c   :  { %589 = vmatprep.subr.mxu0 %v860_v0  ;;  %624 = vmatprep.subr.mxu1 %v860_v0  ;;  %v503_v48 = vld [vmem:[%s1030_s2] ss:$0 sm:$0xff]  ;;  %v297_v55 = vld [vmem:[#allocation9 + $0x8] sm:$0xff]  ;;  %v296_v56 = vld [vmem:[#allocation9] sm:$0xff] }
  0x4d   :  { %590 = vmatpush3.msra.mxu0 %v112_v14  ;;  %625 = vmatpush3.msra.mxu1 %v208_v19  ;;  %v298_v54 = vld [vmem:[#allocation9 + $0x10] sm:$0xff]  ;;  %v407_v57 = vld [vmem:[#allocation11 + $0x78] sm:$0xff]  ;;  %v405_v59 = vld [vmem:[#allocation11 + $0x68] sm:$0xff] }
  0x4e   :  { %591 = vmatprep.subr.mxu0 %v860_v0  ;;  %626 = vmatprep.subr.mxu1 %v860_v0  ;;  %v406_v58 = vld [vmem:[#allocation11 + $0x70] sm:$0xff]  ;;  %v404_v60 = vld [vmem:[#allocation11 + $0x60] sm:$0xff]  ;;  %v403_v61 = vld [vmem:[#allocation11 + $0x58] sm:$0xff] }
  0x4f   :  { %592 = vmatpush3.msra.mxu0 %v111_v16  ;;  %627 = vmatpush3.msra.mxu1 %v207_v21  ;;  %v402_v62 = vld [vmem:[#allocation11 + $0x50] sm:$0xff]  ;;  %v401_v63 = vld [vmem:[#allocation11 + $0x48] sm:$0xff]  ;;  %v400_v1 = vld [vmem:[#allocation11 + $0x40] sm:$0xff] }
  0x50   :  { %593 = vmatprep.subr.mxu0 %v860_v0  ;;  %628 = vmatprep.subr.mxu1 %v860_v0  ;;  %v399_v2 = vld [vmem:[#allocation11 + $0x38] sm:$0xff]  ;;  %v398_v3 = vld [vmem:[#allocation11 + $0x30] sm:$0xff]  ;;  %v397_v4 = vld [vmem:[#allocation11 + $0x28] sm:$0xff] }
  0x51   :  { %594 = vmatpush3.msra.mxu0 %v110_v18  ;;  %629 = vmatpush3.msra.mxu1 %v206_v23  ;;  %v396_v5 = vld [vmem:[#allocation11 + $0x20] sm:$0xff]  ;;  %v395_v6 = vld [vmem:[#allocation11 + $0x18] sm:$0xff]  ;;  %v504_v7 = vld [vmem:[%s1032_s4] ss:$0 sm:$0xff] }
  0x52   :  { %595 = vmatprep.subr.mxu0 %v860_v0  ;;  %630 = vmatprep.subr.mxu1 %v860_v0  ;;  %v394_v13 = vld [vmem:[#allocation11 + $0x10] sm:$0xff]  ;;  %v393_v14 = vld [vmem:[#allocation11 + $0x8] sm:$0xff]  ;;  %v392_v15 = vld [vmem:[#allocation11] sm:$0xff] }
  0x53   :  { %596 = vmatpush3.msra.mxu0 %v109_v20  ;;  %631 = vmatpush3.msra.mxu1 %v205_v25  ;;  %v505_v16 = vld [vmem:[%s1034_s6] ss:$0 sm:$0xff] }
  0x54   :  { %597 = vmatprep.subr.mxu0 %v860_v0  ;;  %632 = vmatprep.subr.mxu1 %v860_v0 }
  0x55   :  { %598 = vmatpush3.msra.mxu0 %v108_v22  ;;  %633 = vmatpush3.msra.mxu1 %v204_v27  ;;  %v506_v22 = vld [vmem:[%s1036_s8] ss:$0 sm:$0xff] }
  0x56   :  { %599 = vmatprep.subr.mxu0 %v860_v0  ;;  %634 = vmatprep.subr.mxu1 %v860_v0 }
  0x57   :  { %600 = vmatpush3.msra.mxu0 %v107_v24  ;;  %635 = vmatpush3.msra.mxu1 %v203_v29 }
  0x58   :  { %601 = vmatprep.subr.mxu0 %v860_v0  ;;  %636 = vmatprep.subr.mxu1 %v860_v0 }
  0x59   :  { %602 = vmatpush3.msra.mxu0 %v106_v26  ;;  %637 = vmatpush3.msra.mxu1 %v202_v32 }
  0x5a   :  { %603 = vmatprep.subr.mxu0 %v860_v0  ;;  %638 = vmatprep.subr.mxu1 %v860_v0 }
  0x5b   :  { %604 = vmatpush3.msra.mxu0 %v105_v28  ;;  %639 = vmatpush3.msra.mxu1 %v201_v33 }
  0x5c   :  { %605 = vmatprep.subr.mxu0 %v860_v0  ;;  %640 = vmatprep.subr.mxu1 %v860_v0 }
  0x5d   :  { %606 = vmatpush3.msra.mxu0 %v104_v30  ;;  %641 = vmatpush3.msra.mxu1 %v200_v34 }
  0x5e   :  { %608 = vmatmul.mubr.f32.vlgmr.msra.gmra.mxu0 %v103_v31  ;;  %645 = vmatprep.subr.mxu0 %v860_v0 }
  0x5f   :  { %677 = vmatprep.mubr.msk.f32.mxu0 %vm861_vm0, %v860_v0  ;;  %680 = vmatprep.subr.mxu1 %v860_v0 }
  0x60   :  { %646 = vmatpush3.msra.mxu0 %v311_v35 }
  0x61   :  { %647 = vmatprep.subr.mxu0 %v860_v0 }
  0x62   :  { %648 = vmatpush3.msra.mxu0 %v310_v36 }
  0x63   :  { %649 = vmatprep.subr.mxu0 %v860_v0 }
  0x64   :  { %650 = vmatpush3.msra.mxu0 %v309_v37 }
  0x65   :  { %651 = vmatprep.subr.mxu0 %v860_v0 }
  0x66   :  { %652 = vmatpush3.msra.mxu0 %v308_v38 }
  0x67   :  { %653 = vmatprep.subr.mxu0 %v860_v0 }
  0x68   :  { %654 = vmatpush3.msra.mxu0 %v307_v39 }
  0x69   :  { %655 = vmatprep.subr.mxu0 %v860_v0 }
  0x6a   :  { %656 = vmatpush3.msra.mxu0 %v306_v40 }
  0x6b   :  { %657 = vmatprep.subr.mxu0 %v860_v0 }
  0x6c   :  { %658 = vmatpush3.msra.mxu0 %v305_v41 }
  0x6d   :  { %659 = vmatprep.subr.mxu0 %v860_v0 }
  0x6e   :  { %660 = vmatpush3.msra.mxu0 %v304_v42 }
  0x6f   :  { %661 = vmatprep.subr.mxu0 %v860_v0 }
  0x70   :  { %662 = vmatpush3.msra.mxu0 %v303_v43 }
  0x71   :  { %663 = vmatprep.subr.mxu0 %v860_v0 }
  0x72   :  { %664 = vmatpush3.msra.mxu0 %v302_v44 }
  0x73   :  { %665 = vmatprep.subr.mxu0 %v860_v0 }
  0x74   :  { %666 = vmatpush3.msra.mxu0 %v301_v45 }
  0x75   :  { %667 = vmatprep.subr.mxu0 %v860_v0 }
  0x76   :  { %668 = vmatpush3.msra.mxu0 %v300_v46 }
  0x77   :  { %669 = vmatprep.subr.mxu0 %v860_v0 }
  0x78   :  { %670 = vmatpush3.msra.mxu0 %v299_v47 }
  0x79   :  { %671 = vmatprep.subr.mxu0 %v860_v0 }
  0x7a   :  { %672 = vmatpush3.msra.mxu0 %v298_v54 }
  0x7b   :  { %673 = vmatprep.subr.mxu0 %v860_v0 }
  0x7c   :  { %674 = vmatpush3.msra.mxu0 %v297_v55 }
  0x7d   :  { %675 = vmatprep.subr.mxu0 %v860_v0 }
  0x7e   :  { %676 = vmatpush3.msra.mxu0 %v296_v56 }
 0x11e   :  { %v193_v49 = vpop.f32.mrf.mxu0 }
 0x11f   :  { %v194_v50 = vadd.f32 %v503_v48, %v193_v49 }
 0x120   :  { %v609_v51 = vpop.f32.mrf.mxu0 }
 0x121   :  { %v198_v52 = vmul.f32 0.01, %v194_v50  ;;  %vm197_vm2 = vcmp.gt.f32.partialorder %v194_v50, 0.0 }
 0x123   :  { %v199_v53 = vsel %vm197_vm2, %v194_v50, %v198_v52 }
 0x124   :  { %643 = vmatmul.mubr.f32.vlgmr.msra.gmra.mxu1 %v199_v53 }
 0x125   :  { %712 = vmatprep.mubr.msk.f32.mxu1 %vm861_vm0, %v860_v0  ;;  %681 = vmatpush3.msra.mxu1 %v407_v57 }
 0x126   :  { %682 = vmatprep.subr.mxu1 %v860_v0 }
 0x127   :  { %683 = vmatpush3.msra.mxu1 %v406_v58 }
 0x128   :  { %684 = vmatprep.subr.mxu1 %v860_v0 }
 0x129   :  { %685 = vmatpush3.msra.mxu1 %v405_v59 }
 0x12a   :  { %686 = vmatprep.subr.mxu1 %v860_v0 }
 0x12b   :  { %687 = vmatpush3.msra.mxu1 %v404_v60 }
 0x12c   :  { %688 = vmatprep.subr.mxu1 %v860_v0 }
 0x12d   :  { %689 = vmatpush3.msra.mxu1 %v403_v61 }
 0x12e   :  { %690 = vmatprep.subr.mxu1 %v860_v0 }
 0x12f   :  { %691 = vmatpush3.msra.mxu1 %v402_v62 }
 0x130   :  { %692 = vmatprep.subr.mxu1 %v860_v0 }
 0x131   :  { %693 = vmatpush3.msra.mxu1 %v401_v63 }
 0x132   :  { %694 = vmatprep.subr.mxu1 %v860_v0 }
 0x133   :  { %695 = vmatpush3.msra.mxu1 %v400_v1 }
 0x134   :  { %696 = vmatprep.subr.mxu1 %v860_v0 }
 0x135   :  { %697 = vmatpush3.msra.mxu1 %v399_v2 }
 0x136   :  { %698 = vmatprep.subr.mxu1 %v860_v0 }
 0x137   :  { %699 = vmatpush3.msra.mxu1 %v398_v3 }
 0x138   :  { %700 = vmatprep.subr.mxu1 %v860_v0 }
 0x139   :  { %701 = vmatpush3.msra.mxu1 %v397_v4 }
 0x13a   :  { %702 = vmatprep.subr.mxu1 %v860_v0 }
 0x13b   :  { %703 = vmatpush3.msra.mxu1 %v396_v5 }
 0x13c   :  { %704 = vmatprep.subr.mxu1 %v860_v0 }
 0x13d   :  { %705 = vmatpush3.msra.mxu1 %v395_v6 }
 0x13e   :  { %706 = vmatprep.subr.mxu1 %v860_v0 }
 0x13f   :  { %707 = vmatpush3.msra.mxu1 %v394_v13 }
 0x140   :  { %708 = vmatprep.subr.mxu1 %v860_v0 }
 0x141   :  { %709 = vmatpush3.msra.mxu1 %v393_v14 }
 0x142   :  { %710 = vmatprep.subr.mxu1 %v860_v0 }
 0x143   :  { %711 = vmatpush3.msra.mxu1 %v392_v15 }
 0x1e4   :  { %v289_v8 = vpop.f32.mrf.mxu1 }
 0x1e5   :  { %v290_v9 = vadd.f32 %v504_v7, %v289_v8 }
 0x1e6   :  { %v644_v10 = vpop.f32.mrf.mxu1 }
 0x1e7   :  { %vm293_vm3 = vcmp.gt.f32.partialorder %v290_v9, 0.0  ;;  %v294_v11 = vmul.f32 0.01, %v290_v9 }
 0x1e9   :  { %v295_v12 = vsel %vm293_vm3, %v290_v9, %v294_v11 }
 0x1ea   :  { %678 = vmatmul.mubr.f32.vlgmr.msra.gmra.mxu0 %v295_v12 }
 0x2aa   :  { %v385_v17 = vpop.f32.mrf.mxu0 }
 0x2ab   :  { %v386_v18 = vadd.f32 %v505_v16, %v385_v17 }
 0x2ac   :  { %v679_v19 = vpop.f32.mrf.mxu0 }
 0x2ad   :  { %vm389_vm4 = vcmp.gt.f32.partialorder %v386_v18, 0.0  ;;  %v390_v20 = vmul.f32 0.01, %v386_v18 }
 0x2af   :  { %v391_v21 = vsel %vm389_vm4, %v386_v18, %v390_v20 }
 0x2b0   :  { %713 = vmatmul.mubr.f32.vlgmr.msra.gmra.mxu1 %v391_v21 }
 0x370   :  { %v481_v23 = vpop.f32.mrf.mxu1 }
 0x371   :  { %v482_v0 = vadd.f32 %v506_v22, %v481_v23 }
 0x372   :  { %v714_v24 = vpop.f32.mrf.mxu1 }
 0x373   :  { %485 = vst [vmem:[#allocation12] sm:$0xff] %v482_v0 }
 0x374   :  { %836 = shalt.err (!%p833_p1)
}
 0x375   :  { %495 = dma.vmem_to_hbm [thread:$0]  %s493_s17, 128, %s1037_s9, [#allocation5]  }
 0x376   :  { %851 = dma.done.wait [#allocation5], 128  }
 0x377   :  { %852 = vsyncadd [#allocation5], 4294967168 }
 0x378   :  { %499 = vsyncpa [#allocation4], 1 }
 0x379   :  { %500 = vsyncpa [#allocation7], 1 }
 0x37a   :  { %501 = vsyncpa [#allocation10], 1 }
 0x37b   :  { %502 = vsyncpa [#allocation5], 1 }

</bundles_post_ra>
